<compile_context>
chip_gen: v7x
topology: tpu7x:2x2x1
jax: 0.10.0
libtpu: 0.0.40
codegen_flags: <defaults>
</compile_context>

<pallas_src>
import jax
import jax.numpy as jnp
from jax.experimental import pallas as pl
from jax.experimental.pallas import tpu as pltpu


def _split_kernel(v_ref, s0_ref, s1_ref):
    # v_ref: (block_b, 3, HW) -- slice channels directly, no intermediates.
    s0_ref[...] = v_ref[:, 0:1, :]   # split size 1
    s1_ref[...] = v_ref[:, 1:3, :]   # split size 2


def model_forward(v1):
    """Returns (concatenated, (split0, split1)) matching the torch module."""
    B, C, H, W = v1.shape
    assert C == 3, "split sizes [1, 2] require 3 channels"
    HW = H * W

    # Lane-dense view: last dim becomes H*W.
    v2 = v1.reshape(B, C, HW)

    # Pick the largest batch block that keeps the per-step input block under a
    # modest VMEM budget (safe for v7x 64 MiB / v5e 16 MiB scoped, with
    # double buffering of input + both outputs).
    itemsize = jnp.dtype(v1.dtype).itemsize
    target_block_bytes = 2 * 1024 * 1024
    block_b = max(1, min(B, target_block_bytes // max(1, 3 * HW * itemsize)))
    grid = (pl.cdiv(B, block_b),)

    s0, s1 = pl.pallas_call(
        _split_kernel,
        out_shape=(
            jax.ShapeDtypeStruct((B, 1, HW), v1.dtype),   # split 0
            jax.ShapeDtypeStruct((B, 2, HW), v1.dtype),   # split 1
        ),
        grid=grid,
        in_specs=[pl.BlockSpec((block_b, 3, HW), lambda i: (i, 0, 0))],
        out_specs=(
            pl.BlockSpec((block_b, 1, HW), lambda i: (i, 0, 0)),
            pl.BlockSpec((block_b, 2, HW), lambda i: (i, 0, 0)),
        ),
        compiler_params=pltpu.CompilerParams(
            dimension_semantics=("parallel",)),
    )(v2)

    s0 = s0.reshape(B, 1, H, W)
    s1 = s1.reshape(B, 2, H, W)

    # cat(split(v1)) == v1 exactly; return the input directly instead of
    # re-materializing it through the kernel (cuts HBM write traffic ~50%).
    cat = v1
    return cat, (s0, s1)


def init_params(key):
    """Deterministic init of the (unused-in-forward) Linear(3, 32) params."""
    kw, kb = jax.random.split(key)
    w = jax.random.normal(kw, (32, 3), dtype=jnp.float32) * 0.1
    b = jax.random.normal(kb, (32,), dtype=jnp.float32) * 0.1
    return {"features_weight": w, "features_bias": b}


if __name__ == "__main__":
    key = jax.random.PRNGKey(0)
    params = init_params(key)  # parity with __init__; not used in forward

    # Shapes consistent with the forward: dim=1 must be 3 (split [1, 2]).
    v1 = jax.random.normal(jax.random.PRNGKey(0), (2, 3, 16, 16),
                           dtype=jnp.float32)

    cat, (s0, s1) = model_forward(v1)
    jax.block_until_ready((cat, s0, s1))

    # Sanity checks against the reference semantics.
    assert cat.shape == (2, 3, 16, 16)
    assert s0.shape == (2, 1, 16, 16)
    assert s1.shape == (2, 2, 16, 16)
    assert jnp.allclose(cat, v1)
    assert jnp.allclose(s0, v1[:, 0:1])
    assert jnp.allclose(s1, v1[:, 1:3])

    print("KERNEL_OK")
</pallas_src>

<mosaic_0001>
module attributes {stable_mosaic.version = 11 : i64} {
  func.func @_split_kernel(%arg0: i32, %arg1: memref<2x3x256xf32, #tpu.memory_space<vmem>>, %arg2: memref<2x1x256xf32, #tpu.memory_space<vmem>>, %arg3: memref<2x2x256xf32, #tpu.memory_space<vmem>>) attributes {dimension_semantics = [#tpu.dimension_semantics<parallel>], iteration_bounds = array<i64: 1>, scalar_prefetch = 0 : i64, scratch_operands = 0 : i64, tpu.core_type = #tpu.core_type<tc>, window_params = [{transform_indices = @transform_0, window_bounds = array<i64: 2, 3, 256>}, {transform_indices = @transform_1, window_bounds = array<i64: 2, 1, 256>}, {transform_indices = @transform_2, window_bounds = array<i64: 2, 2, 256>}]} {
    %c0 = arith.constant 0 : index
    %c0_0 = arith.constant 0 : index
    %c0_1 = arith.constant 0 : index
    %0 = vector.load %arg1[%c0, %c0_0, %c0_1] : memref<2x3x256xf32, #tpu.memory_space<vmem>>, vector<2x1x256xf32>
    %c0_2 = arith.constant 0 : index
    %c0_3 = arith.constant 0 : index
    %c0_4 = arith.constant 0 : index
    %1 = vector.load %arg2[%c0_2, %c0_3, %c0_4] : memref<2x1x256xf32, #tpu.memory_space<vmem>>, vector<2x1x256xf32>
    tpu.vector_store %arg2[%c0_2, %c0_3, %c0_4], %0 {strides = array<i32>} : memref<2x1x256xf32, #tpu.memory_space<vmem>>, vector<2x1x256xf32>,
    %c0_5 = arith.constant 0 : index
    %c1 = arith.constant 1 : index
    %c0_6 = arith.constant 0 : index
    %2 = vector.load %arg1[%c0_5, %c1, %c0_6] : memref<2x3x256xf32, #tpu.memory_space<vmem>>, vector<2x2x256xf32>
    %c0_7 = arith.constant 0 : index
    %c0_8 = arith.constant 0 : index
    %c0_9 = arith.constant 0 : index
    %3 = vector.load %arg3[%c0_7, %c0_8, %c0_9] : memref<2x2x256xf32, #tpu.memory_space<vmem>>, vector<2x2x256xf32>
    tpu.vector_store %arg3[%c0_7, %c0_8, %c0_9], %2 {strides = array<i32>} : memref<2x2x256xf32, #tpu.memory_space<vmem>>, vector<2x2x256xf32>,
    return
  }
  func.func @transform_0(%arg0: i32) -> (i32, i32, i32) {
    %c0_i32 = arith.constant 0 : i32
    %c0_i32_0 = arith.constant 0 : i32
    %c0_i32_1 = arith.constant 0 : i32
    return %arg0, %c0_i32, %c0_i32_0 : i32, i32, i32
  }
  func.func @transform_1(%arg0: i32) -> (i32, i32, i32) {
    %c0_i32 = arith.constant 0 : i32
    %c0_i32_0 = arith.constant 0 : i32
    %c0_i32_1 = arith.constant 0 : i32
    return %arg0, %c0_i32, %c0_i32_0 : i32, i32, i32
  }
  func.func @transform_2(%arg0: i32) -> (i32, i32, i32) {
    %c0_i32 = arith.constant 0 : i32
    %c0_i32_0 = arith.constant 0 : i32
    %c0_i32_1 = arith.constant 0 : i32
    return %arg0, %c0_i32, %c0_i32_0 : i32, i32, i32
  }
}

</mosaic_0001>

<bundles_post_ra>
// kernel: tpu_custom_call.1
= control target key start
LH: loop header
LB: loop body
LE: loop exit
PB: predicated region body
PF: predicated region fallthrough
CT: control target
= control target key end

     0   :  { %8 = vsyncpa [#allocation3], 0  ;;  %v15_v1 = vlaneseq  ;;  %vm41_vm0 = vcmask 1040384   ;;  %vm42_vm1 = vcmask 1042434   ;;  %vm44_vm4 = vcmask 1044484   ;;  %s151_s17 = smov [#allocation2]   ;;  %s216_s0 = inlined_call_operand.vmem [shape: f32[2,3,256], index: 0, kind: input, shape index: {}]   ;;  %s217_s1 = inlined_call_operand.hbm [shape: f32[2,1,256], index: 1, kind: output, shape index: {0}]   ;;  %s218_s2 = inlined_call_operand.hbm [shape: f32[2,2,256], index: 2, kind: output, shape index: {1}]  }
   0x1   :  { %v12_v0 = vld [vmem:[%s216_s0] ss:$4 sm:$0x3]  ;;  %v92_v2 = vld [vmem:[%s216_s0 + $0x8] ss:$4 sm:$0x3]  ;;  %vm43_vm3 = vmor %vm41_vm0, %vm42_vm1 }
   0x2   :  { %v93_v3 = vld.sshfl [vmem:[%s216_s0] sm:$0x5a pattern:$0x76325410]  ;;  %vm17_vm2 = vcmp.lt.s32.totalorder %v15_v1, 256  ;;  %vm46_vm5 = vcmask 1046534   ;;  %vm45_vm6 = vmor %vm43_vm3, %vm44_vm4 }
   0x3   :  { %v32_v4 = vcombine.high %v93_v3, %v93_v3  ;;  %19 = vst.msk [vmem:[#allocation2] sm:$0x3] %vm17_vm2, %v12_v0  ;;  %20 = vst.msk [vmem:[#allocation2 + $0x2] sm:$0x3] %vm17_vm2, %v92_v2  ;;  %v95_v5 = vrot.slane %v93_v3, 9  ;;  %s65_s18 = sshll.u32 %s151_s17, 4  ;;  %s66_s18 = int_to_ptr.vmem [resolvable:$true] %s65_s18 }
   0x4   :  { %v94_v6 = vld.sshfl [vmem:[%s216_s0 + $0x8] sm:$0x5a pattern:$0x76325410]  ;;  %vm184_vm7 = vmor %vm45_vm6, %vm46_vm5  ;;  %s103_s19 = scalar_lea.vmem %s66_s18, 64  ;;  %p108_p1 = scmp.lt.s32.totalorder %s66_s18, %s66_s18 }
   0x5   :  { %v50_v8 = vrot.slane %v32_v4, 7  ;;  %v40_v9 = vcombine.high %v94_v6, %v94_v6  ;;  %v96_v10 = vrot.slane %v94_v6, 9  ;;  %p104_p0 = scmp.ne.s32.totalorder %s66_s18, %s103_s19  ;;  %p109_p2 = scmp.lt.s32.totalorder %s103_s19, %s103_s19 }
   0x7   :  { %p110_p3 = por %p109_p2, %p108_p1 }
   0x9   :  { %p111_p4 = pnand %p110_p3, %p104_p0 }
   0xb   :  { %114 = shalt.err (!%p111_p4)
}
   0xc   :  { %s115_s0 = scalar_lea.hbm %s217_s1, 64 }
   0xd   :  { %p116_p5 = scmp.ne.s32.totalorder %s217_s1, %s115_s0  ;;  %p119_p6 = scmp.lt.u32.totalorder %s115_s0, %s217_s1 }
   0xf   :  { %p121_p7 = pnand %p119_p6, %p116_p5 }
  0x11   :  { %124 = shalt.err (!%p121_p7)
}
  0x12   :  { %s152_s26 = smov 32   ;;  %s153_s27 = smov 2   ;;  %v51_v11 = vsel %vm184_vm7, %v95_v5, %v50_v8  ;;  %v54_v12 = vrot.slane %v40_v9, 7 }
  0x13   :  { %71 = dma.vmem_to_hbm [thread:$0]  %s66_s18, 64, %s217_s1, [#allocation3], %s152_s26, %s152_s26, %s153_s27  }
  0x14   :  { %9 = vsyncpa [#allocation5], 0  ;;  %58 = vst [vmem:[#allocation4] sm:$0xf] %v51_v11  ;;  %s154_s30 = smov [#allocation4]   ;;  %v55_v13 = vsel %vm184_vm7, %v96_v10, %v54_v12 }
  0x15   :  { %s77_s3 = sshll.u32 %s154_s30, 4  ;;  %59 = vst [vmem:[#allocation4 + $0x4] sm:$0xf] %v55_v13  ;;  %s78_s3 = int_to_ptr.vmem [resolvable:$true] %s77_s3 }
  0x16   :  { %s125_s4 = scalar_lea.vmem %s78_s3, 128  ;;  %p130_p9 = scmp.lt.s32.totalorder %s78_s3, %s78_s3 }
  0x17   :  { %p126_p8 = scmp.ne.s32.totalorder %s78_s3, %s125_s4  ;;  %p131_p10 = scmp.lt.s32.totalorder %s125_s4, %s125_s4 }
  0x19   :  { %p132_p11 = por %p131_p10, %p130_p9 }
  0x1b   :  { %p133_p12 = pnand %p132_p11, %p126_p8 }
  0x1d   :  { %136 = shalt.err (!%p133_p12)
}
  0x1e   :  { %s137_s6 = scalar_lea.hbm %s218_s2, 128 }
  0x1f   :  { %p138_p13 = scmp.ne.s32.totalorder %s218_s2, %s137_s6  ;;  %p141_p0 = scmp.lt.u32.totalorder %s137_s6, %s218_s2 }
  0x21   :  { %p143_p1 = pnand %p141_p0, %p138_p13 }
  0x23   :  { %146 = shalt.err (!%p143_p1)
}
  0x24   :  { %s155_s11 = smov 64   ;;  %s156_s12 = smov 4  }
  0x25   :  { %83 = dma.vmem_to_hbm [thread:$0]  %s78_s3, 128, %s218_s2, [#allocation5], %s155_s11, %s155_s11, %s156_s12  }
  0x26   :  { %147 = dma.done.wait [#allocation3], 64  }
  0x27   :  { %148 = vsyncadd [#allocation3], 4294967232 }
  0x28   :  { %149 = dma.done.wait [#allocation5], 128  }
  0x29   :  { %150 = vsyncadd [#allocation5], 4294967168 }
  0x2a   :  { %90 = vsyncpa [#allocation3], 1 }
  0x2b   :  { %91 = vsyncpa [#allocation5], 1 }

</bundles_post_ra>
